<compile_context>
chip_gen: v7x
topology: tpu7x:2x2x1
jax: 0.10.0
libtpu: 0.0.40
codegen_flags: <defaults>
</compile_context>

<pallas_src>
import math

import jax
import jax.numpy as jnp
from jax.experimental import pallas as pl
from jax.experimental.pallas import tpu as pltpu

# ----------------------------- constants --------------------------------
NUMBER_OF_CARDS_PER_SUIT = 13
NUMBER_OF_AGENTS = 5
NUMBER_OF_POSSIBLE_STATES = 15

PASS_ACTION = 1
TWO_OF_HEARTS = 1
ACTION_SPACE = NUMBER_OF_CARDS_PER_SUIT + TWO_OF_HEARTS + PASS_ACTION        # 15
LAST_ACTION = 1
OTHER_PLAYERS_FEATURES = NUMBER_OF_AGENTS                                    # 5
THROWN_CARDS_FEATURES = NUMBER_OF_CARDS_PER_SUIT + 1                         # 14
DIM_INPUT = (NUMBER_OF_CARDS_PER_SUIT + TWO_OF_HEARTS + PASS_ACTION
             + ACTION_SPACE + THROWN_CARDS_FEATURES
             + OTHER_PLAYERS_FEATURES + LAST_ACTION)                         # 50
EMBEDDING_SIZE_OUTPUT = 16
HELPER_DIM_INPUT = DIM_INPUT - 1 + EMBEDDING_SIZE_OUTPUT                     # 65
LATENT = 32                                                                  # LATENT_SPACE_NEXT_ACTION
NEURONS = 128
VOCAB = NUMBER_OF_POSSIBLE_STATES + 2                                        # 17 (embedding rows)
HEAD_OUT = NUMBER_OF_POSSIBLE_STATES + 1                                     # 16 (softmax width)
HEADS = 4
HEAD_LANES = HEADS * HEAD_OUT                                                # 64
STATE_DIM = DIM_INPUT - 1                                                    # 49
IN_LANES = 128                                                               # lane-dense padded input
OUT_LANES = 128                                                              # lane-dense output slab
LN_EPS = 1e-5


# ------------------------- shared helpers -----------------------------
def _layernorm(x, g, b):
    # single-pass form: var = E[x^2] - mu^2 (two independent cross-lane reductions)
    mu = jnp.mean(x, axis=-1, keepdims=True)
    ms = jnp.mean(x * x, axis=-1, keepdims=True)
    var = jnp.maximum(ms - mu * mu, 0.0)
    return (x - mu) * jax.lax.rsqrt(var + LN_EPS) * g + b


# ------------------------------ kernel -----------------------------------
def helper_nnet_kernel(x_ref, w1_ref, w2_ref, w3_ref, w4hs_ref, s128_ref, s256_ref,
                       out_ref):
    B = x_ref.shape[0]
    x = x_ref[...]                                                  # (B, 128) f32, lanes >=50 zero

    # lane iota reused for the layer-1 one-hot and the head-lane mask
    col = jax.lax.broadcasted_iota(jnp.int32, (B, IN_LANES), 1)

    # last_action one-hot folded into lanes 50:67 of the layer-1 operand
    la_lane = x[:, STATE_DIM:DIM_INPUT].astype(jnp.int32) + (DIM_INPUT + 1)   # (B,1) in [50,66]
    x1 = (x + (col == la_lane).astype(jnp.float32)).astype(jnp.bfloat16)      # (B,128)

    # packed small params (static slices, free)
    b1, g1, be1 = s128_ref[0:1, :], s128_ref[1:2, :], s128_ref[2:3, :]
    b3, g3, be3 = s128_ref[3:4, :], s128_ref[4:5, :], s128_ref[5:6, :]
    b4p = s128_ref[6:7, :]                                          # b4 in lanes 0:32
    bhp = s128_ref[7:8, :]                                          # head biases in lanes 32:96
    b2, g2, be2 = s256_ref[0:1, :], s256_ref[1:2, :], s256_ref[2:3, :]

    w4f = w4hs_ref[0:NEURONS, :]                                    # (128,128) latent -> lanes 0:32
    whf = w4hs_ref[NEURONS:2 * NEURONS, :]                          # (128,128) heads  -> lanes 32:96
    seg = w4hs_ref[2 * NEURONS:3 * NEURONS, :]                      # (128,128) block-diag ones

    # --- trunk: bf16 MXU operands, f32 accumulate + f32 LayerNorm ---
    h = jnp.dot(x1, w1_ref[...], preferred_element_type=jnp.float32) + b1
    h = jnp.maximum(_layernorm(h, g1, be1), 0.0)                    # (B, 128)

    h = jnp.dot(h.astype(jnp.bfloat16), w2_ref[...], preferred_element_type=jnp.float32) + b2
    h = jnp.maximum(_layernorm(h, g2, be2), 0.0)                    # (B, 256)

    h = jnp.dot(h.astype(jnp.bfloat16), w3_ref[...], preferred_element_type=jnp.float32) + b3
    h = jnp.maximum(_layernorm(h, g3, be3), 0.0)                    # (B, 128)

    # latent in lanes 0:32, zeros elsewhere (weight/bias lane-padded in pack_params)
    latent128 = jnp.dot(h.astype(jnp.bfloat16), w4f, preferred_element_type=jnp.float32) + b4p

    # --- 4 heads fused, computed directly into lanes 32:96 ---
    z = jnp.maximum(latent128, 0.0).astype(jnp.bfloat16)            # relu(latent), zeros outside 0:32
    logits = jnp.dot(z, whf, preferred_element_type=jnp.float32) + bhp  # head logits in lanes 32:96

    head_mask = (col >= LATENT) & (col < LATENT + HEAD_LANES)
    mask_f = head_mask.astype(jnp.float32)

    # shared row max over the head lanes (exact per-group shift up to underflow)
    m = jnp.max(jnp.where(head_mask, logits, -1e30), axis=-1, keepdims=True)
    e = jnp.exp(jnp.where(head_mask, logits - m, -1e30))            # exactly 0 outside head lanes

    # per-group sums via block-diagonal ones matmul (bf16 operands, single MXU pass)
    denom = jnp.dot(e.astype(jnp.bfloat16), seg, preferred_element_type=jnp.float32)
    # TODO(synk): shared-max grouped softmax; a head whose logits all underflow yields zeros
    # (guarded below) instead of NaN -- use per-group max if trained heads diverge wildly.
    denom = jnp.maximum(denom + (1.0 - mask_f), 1e-30)
    probs = e * pl.reciprocal(denom, approx=True)                   # zeros outside head lanes

    # --- single unmasked full-lane store: latent | head softmaxes | zeros ---
    out_ref[...] = latent128 + probs


# --------------------------- batch tiling ----------------------------
def _batch_tiling(B):
    """tb multiple of 8, tb | bpad, tb <= 128; >= 2 grid steps when bpad >= 16 (v7x megacore)."""
    if B <= 8:
        return 8, 8
    if B <= 256:
        bpad = ((B + 15) // 16) * 16
        return bpad // 2, bpad          # 2 grid steps -> both TensorCores on v7x
    tb = 128
    bpad = ((B + tb - 1) // tb) * tb
    return tb, bpad


# ------------------------------ wrapper -----------------------------------
def _forward(x, packed_params):
    """x: (B, DIM_INPUT) or (DIM_INPUT,). Returns (latent, (p1, p2, p3, p4))."""
    if x.ndim == 1:
        x = x[None, :]
    x = x.astype(jnp.float32)
    B = x.shape[0]
    tb, bpad = _batch_tiling(B)

    # pad batch rows (zeros -> last_action 0 -> valid one-hot) and lanes to 128
    xp = jnp.pad(x, ((0, bpad - B), (0, IN_LANES - DIM_INPUT)))
    grid = (bpad // tb,)

    vmem = pl.BlockSpec(memory_space=pltpu.MemorySpace.VMEM)   # whole-array, VMEM-resident params
    out = pl.pallas_call(
        helper_nnet_kernel,
        out_shape=jax.ShapeDtypeStruct((bpad, OUT_LANES), jnp.float32),
        grid=grid,
        in_specs=[pl.BlockSpec((tb, IN_LANES), lambda i: (i, 0))] + [vmem] * len(packed_params),
        out_specs=pl.BlockSpec((tb, OUT_LANES), lambda i: (i, 0)),
        compiler_params=pltpu.CompilerParams(dimension_semantics=("parallel",)),
    )(xp, *packed_params)

    latent = out[:B, 0:LATENT]
    heads = tuple(out[:B, LATENT + h * HEAD_OUT: LATENT + (h + 1) * HEAD_OUT]
                  for h in range(HEADS))
    return latent, heads


# one jit over pad + pallas_call + slicing (removes per-call XLA dispatch overhead)
helper_nnet_forward = jax.jit(_forward)


# --------------------------- parameter handling ----------------------------
def init_params(key):
    """Torch-like init. Linear weights stored (in, out); biases (1, out)."""
    keys = iter(jax.random.split(key, 40))

    def linear(fan_in, fan_out):
        bound = 1.0 / math.sqrt(fan_in)
        w = jax.random.uniform(next(keys), (fan_in, fan_out), jnp.float32, -bound, bound)
        b = jax.random.uniform(next(keys), (1, fan_out), jnp.float32, -bound, bound)
        return w, b

    emb_table = jax.random.normal(next(keys), (VOCAB, EMBEDDING_SIZE_OUTPUT), jnp.float32)
    emb_g = jnp.ones((1, EMBEDDING_SIZE_OUTPUT), jnp.float32)
    emb_b = jnp.zeros((1, EMBEDDING_SIZE_OUTPUT), jnp.float32)

    w1, b1 = linear(HELPER_DIM_INPUT, NEURONS)
    g1, be1 = jnp.ones((1, NEURONS), jnp.float32), jnp.zeros((1, NEURONS), jnp.float32)
    w2, b2 = linear(NEURONS, NEURONS * 2)
    g2, be2 = jnp.ones((1, NEURONS * 2), jnp.float32), jnp.zeros((1, NEURONS * 2), jnp.float32)
    w3, b3 = linear(NEURONS * 2, NEURONS)
    g3, be3 = jnp.ones((1, NEURONS), jnp.float32), jnp.zeros((1, NEURONS), jnp.float32)
    w4, b4 = linear(NEURONS, LATENT)

    heads = []
    for _ in range(HEADS):
        heads.extend(linear(LATENT, HEAD_OUT))

    return (emb_table, emb_g, emb_b,
            w1, b1, g1, be1,
            w2, b2, g2, be2,
            w3, b3, g3, be3,
            w4, b4, *heads)


def pack_params(raw):
    """Fold / consolidate raw params into the 6 kernel inputs."""
    (emb_table, emb_g, emb_b,
     w1, b1, g1, be1,
     w2, b2, g2, be2,
     w3, b3, g3, be3,
     w4, b4,
     wh1, bh1, wh2, bh2, wh3, bh3, wh4, bh4) = raw

    # exact fold: Embedding + LayerNorm commutes with the row gather, so
    # LN(emb_table)[la] @ W1_emb == onehot(la) @ (LN(emb_table) @ W1_emb)
    ln_rows = _layernorm(emb_table, emb_g, emb_b)                    # (17, 16)
    w1e_fused = ln_rows @ w1[STATE_DIM:]                             # (17, 128)

    # fused layer-1 weight over the padded (B,128) operand:
    #   rows 0:49 state weights, row 49 (raw last_action column) zero,
    #   rows 50:67 one-hot(embedding) weights, rest zero
    w1_full = jnp.zeros((IN_LANES, NEURONS), jnp.float32)
    w1_full = w1_full.at[:STATE_DIM, :].set(w1[:STATE_DIM])
    w1_full = w1_full.at[DIM_INPUT:DIM_INPUT + VOCAB, :].set(w1e_fused)
    w1_full = w1_full.astype(jnp.bfloat16)                           # (128, 128)

    # w4 / head weights / block-diag seg padded to 128 output lanes and stacked:
    #   latent -> lanes 0:32, head logits -> lanes 32:96
    w4_full = jnp.zeros((NEURONS, OUT_LANES), jnp.float32).at[:, :LATENT].set(w4)
    wh_cat = jnp.concatenate([wh1, wh2, wh3, wh4], axis=1)           # (32, 64)
    wh_full = jnp.zeros((NEURONS, OUT_LANES), jnp.float32).at[:LATENT, LATENT:LATENT + HEAD_LANES].set(wh_cat)
    grp = jnp.arange(HEAD_LANES) // HEAD_OUT
    seg64 = (grp[:, None] == grp[None, :]).astype(jnp.float32)       # (64, 64) block-diag ones
    seg_full = jnp.zeros((OUT_LANES, OUT_LANES), jnp.float32).at[LATENT:LATENT + HEAD_LANES,
                                                                 LATENT:LATENT + HEAD_LANES].set(seg64)
    w4hs = jnp.concatenate([w4_full, wh_full, seg_full], axis=0).astype(jnp.bfloat16)  # (384, 128)

    bh_cat = jnp.concatenate([bh1, bh2, bh3, bh4], axis=1)           # (1, 64)
    b4_pad = jnp.zeros((1, OUT_LANES), jnp.float32).at[:, :LATENT].set(b4)
    bh_pad = jnp.zeros((1, OUT_LANES), jnp.float32).at[:, LATENT:LATENT + HEAD_LANES].set(bh_cat)

    slab128 = jnp.concatenate([b1, g1, be1, b3, g3, be3, b4_pad, bh_pad],
                              axis=0).astype(jnp.float32)            # (8, 128)
    slab256 = jnp.concatenate([b2, g2, be2], axis=0).astype(jnp.float32)  # (3, 256)

    return (w1_full,
            w2.astype(jnp.bfloat16), w3.astype(jnp.bfloat16),
            w4hs, slab128, slab256)


# --------------------------- references -----------------------------
def reference_forward(x, raw):
    """Pure-JAX f32 reference that mirrors the torch module exactly."""
    (emb_table, emb_g, emb_b,
     w1, b1, g1, be1, w2, b2, g2, be2, w3, b3, g3, be3, w4, b4,
     wh1, bh1, wh2, bh2, wh3, bh3, wh4, bh4) = raw
    if x.ndim == 1:
        x = x[None, :]
    state = x[:, :STATE_DIM].astype(jnp.float32)
    la = x[:, STATE_DIM].astype(jnp.int32) + 1
    emb = _layernorm(emb_table[la], emb_g, emb_b)
    h = jnp.concatenate([state, emb], axis=1)
    h = jnp.maximum(_layernorm(h @ w1 + b1, g1, be1), 0.0)
    h = jnp.maximum(_layernorm(h @ w2 + b2, g2, be2), 0.0)
    h = jnp.maximum(_layernorm(h @ w3 + b3, g3, be3), 0.0)
    latent = h @ w4 + b4
    z = jnp.maximum(latent, 0.0)
    heads = tuple(jax.nn.softmax(z @ w + b, axis=-1)
                  for w, b in ((wh1, bh1), (wh2, bh2), (wh3, bh3), (wh4, bh4)))
    return latent, heads


def packed_reference_forward(x, packed):
    """Plain-JAX mirror of the kernel arithmetic (bf16 matmul operands, f32 accumulate)."""
    w1, w2, w3, w4hs, s128, s256 = packed
    if x.ndim == 1:
        x = x[None, :]
    xf = x.astype(jnp.float32)
    B = xf.shape[0]

    la_lane = xf[:, STATE_DIM].astype(jnp.int32) + (DIM_INPUT + 1)
    xp = jnp.zeros((B, IN_LANES), jnp.float32).at[:, :DIM_INPUT].set(xf)
    col = jnp.arange(IN_LANES)[None, :]
    x1 = xp + (col == la_lane[:, None]).astype(jnp.float32)

    b1, g1, be1 = s128[0:1], s128[1:2], s128[2:3]
    b3, g3, be3 = s128[3:4], s128[4:5], s128[5:6]
    b4p, bhp = s128[6:7], s128[7:8]
    b2, g2, be2 = s256[0:1], s256[1:2], s256[2:3]
    w4f, whf = w4hs[0:NEURONS], w4hs[NEURONS:2 * NEURONS]

    def dot(a, w):
        return jnp.dot(a.astype(jnp.bfloat16), w, preferred_element_type=jnp.float32)

    h = jnp.maximum(_layernorm(dot(x1, w1) + b1, g1, be1), 0.0)
    h = jnp.maximum(_layernorm(dot(h, w2) + b2, g2, be2), 0.0)
    h = jnp.maximum(_layernorm(dot(h, w3) + b3, g3, be3), 0.0)
    latent128 = dot(h, w4f) + b4p
    latent = latent128[:, :LATENT]
    z = jnp.maximum(latent128, 0.0)
    logits = (dot(z, whf) + bhp)[:, LATENT:LATENT + HEAD_LANES]
    probs = jnp.concatenate(
        [jax.nn.softmax(logits[:, i * HEAD_OUT:(i + 1) * HEAD_OUT], axis=-1)
         for i in range(HEADS)], axis=1)
    return latent, probs


# ------------------------------- main --------------------------------------
if __name__ == "__main__":
    key = jax.random.PRNGKey(0)
    k_param, k_state, k_action = jax.random.split(key, 3)

    raw_params = init_params(k_param)
    packed = pack_params(raw_params)

    B = 8
    state_feats = jax.random.normal(k_state, (B, STATE_DIM), jnp.float32)
    # last action in [-1, NUMBER_OF_POSSIBLE_STATES]; +1 inside forward -> valid embedding index
    last_action = jax.random.randint(k_action, (B, 1), -1, NUMBER_OF_POSSIBLE_STATES + 1)
    x = jnp.concatenate([state_feats, last_action.astype(jnp.float32)], axis=1)  # (B, 50)

    latent, probs = helper_nnet_forward(x, packed)
    jax.block_until_ready((latent,) + probs)

    # (1) tight check vs a JAX mirror of the kernel's bf16-matmul arithmetic
    lat_m, probs_m = packed_reference_forward(x, packed)
    assert jnp.allclose(latent, lat_m, atol=5e-3, rtol=5e-3), "latent vs packed reference"
    p_all = jnp.concatenate(probs, axis=1)
    assert jnp.allclose(p_all, probs_m, atol=1.5e-2, rtol=1.5e-2), "probs vs packed reference"

    # (2) loose check vs the f32, torch-faithful reference (bf16 MXU operands => loosened tol)
    lat_f, heads_f = reference_forward(x, raw_params)
    assert jnp.allclose(latent, lat_f, atol=1.5e-1, rtol=1e-1), "latent vs f32 reference"
    for got, want in zip(probs, heads_f):
        assert jnp.allclose(got, want, atol=5e-2, rtol=5e-2), "probs vs f32 reference"

    # structural sanity on the softmax heads
    for p in probs:
        assert bool(jnp.all(p >= -1e-6))
        assert jnp.allclose(jnp.sum(p, axis=-1), 1.0, atol=2e-2)

    print("KERNEL_OK")
</pallas_src>

<mosaic_0001>
module attributes {stable_mosaic.version = 11 : i64} {
  func.func @helper_nnet_kernel(%arg0: i32, %arg1: memref<8x128xf32, #tpu.memory_space<vmem>>, %arg2: memref<128x128xbf16, #tpu.memory_space<vmem>>, %arg3: memref<128x256xbf16, #tpu.memory_space<vmem>>, %arg4: memref<256x128xbf16, #tpu.memory_space<vmem>>, %arg5: memref<384x128xbf16, #tpu.memory_space<vmem>>, %arg6: memref<8x128xf32, #tpu.memory_space<vmem>>, %arg7: memref<3x256xf32, #tpu.memory_space<vmem>>, %arg8: memref<8x128xf32, #tpu.memory_space<vmem>>) attributes {dimension_semantics = [#tpu.dimension_semantics<parallel>], iteration_bounds = array<i64: 1>, scalar_prefetch = 0 : i64, scratch_operands = 0 : i64, tpu.core_type = #tpu.core_type<tc>, window_params = [{transform_indices = @transform_0, window_bounds = array<i64: 8, 128>}, {pipeline_mode = #tpu.pipeline_mode<synchronous>, transform_indices = @transform_1, window_bounds = array<i64: 128, 128>}, {pipeline_mode = #tpu.pipeline_mode<synchronous>, transform_indices = @transform_2, window_bounds = array<i64: 128, 256>}, {pipeline_mode = #tpu.pipeline_mode<synchronous>, transform_indices = @transform_3, window_bounds = array<i64: 256, 128>}, {pipeline_mode = #tpu.pipeline_mode<synchronous>, transform_indices = @transform_4, window_bounds = array<i64: 384, 128>}, {pipeline_mode = #tpu.pipeline_mode<synchronous>, transform_indices = @transform_5, window_bounds = array<i64: 8, 128>}, {pipeline_mode = #tpu.pipeline_mode<synchronous>, transform_indices = @transform_6, window_bounds = array<i64: 3, 256>}, {transform_indices = @transform_7, window_bounds = array<i64: 8, 128>}]} {
    %c0 = arith.constant 0 : index
    %c0_0 = arith.constant 0 : index
    %0 = vector.load %arg1[%c0, %c0_0] : memref<8x128xf32, #tpu.memory_space<vmem>>, vector<8x128xf32>
    %1 = tpu.iota {dimensions = array<i32: 1>} : vector<8x128xi32>
    %2 = vector.extract_strided_slice %0 {offsets = [0, 49], sizes = [8, 1], strides = [1, 1]} : vector<8x128xf32> to vector<8x1xf32>
    %3 = arith.fptosi %2 : vector<8x1xf32> to vector<8x1xi32>
    %c51_i32 = arith.constant 51 : i32
    %4 = vector.broadcast %c51_i32 : i32 to vector<8x1xi32>
    %5 = arith.addi %3, %4 : vector<8x1xi32>
    %6 = vector.broadcast %5 : vector<8x1xi32> to vector<8x128xi32>
    %7 = arith.cmpi eq, %1, %6 : vector<8x128xi32>
    %8 = arith.extui %7 : vector<8x128xi1> to vector<8x128xi32>
    %9 = arith.sitofp %8 : vector<8x128xi32> to vector<8x128xf32>
    %10 = arith.addf %0, %9 : vector<8x128xf32>
    %11 = arith.truncf %10 : vector<8x128xf32> to vector<8x128xbf16>
    %c0_1 = arith.constant 0 : index
    %c0_2 = arith.constant 0 : index
    %12 = vector.load %arg6[%c0_1, %c0_2] : memref<8x128xf32, #tpu.memory_space<vmem>>, vector<1x128xf32>
    %c1 = arith.constant 1 : index
    %c0_3 = arith.constant 0 : index
    %13 = vector.load %arg6[%c1, %c0_3] : memref<8x128xf32, #tpu.memory_space<vmem>>, vector<1x128xf32>
    %c2 = arith.constant 2 : index
    %c0_4 = arith.constant 0 : index
    %14 = vector.load %arg6[%c2, %c0_4] : memref<8x128xf32, #tpu.memory_space<vmem>>, vector<1x128xf32>
    %c3 = arith.constant 3 : index
    %c0_5 = arith.constant 0 : index
    %15 = vector.load %arg6[%c3, %c0_5] : memref<8x128xf32, #tpu.memory_space<vmem>>, vector<1x128xf32>
    %c4 = arith.constant 4 : index
    %c0_6 = arith.constant 0 : index
    %16 = vector.load %arg6[%c4, %c0_6] : memref<8x128xf32, #tpu.memory_space<vmem>>, vector<1x128xf32>
    %c5 = arith.constant 5 : index
    %c0_7 = arith.constant 0 : index
    %17 = vector.load %arg6[%c5, %c0_7] : memref<8x128xf32, #tpu.memory_space<vmem>>, vector<1x128xf32>
    %c6 = arith.constant 6 : index
    %c0_8 = arith.constant 0 : index
    %18 = vector.load %arg6[%c6, %c0_8] : memref<8x128xf32, #tpu.memory_space<vmem>>, vector<1x128xf32>
    %c7 = arith.constant 7 : index
    %c0_9 = arith.constant 0 : index
    %19 = vector.load %arg6[%c7, %c0_9] : memref<8x128xf32, #tpu.memory_space<vmem>>, vector<1x128xf32>
    %c0_10 = arith.constant 0 : index
    %c0_11 = arith.constant 0 : index
    %20 = vector.load %arg7[%c0_10, %c0_11] : memref<3x256xf32, #tpu.memory_space<vmem>>, vector<1x256xf32>
    %c1_12 = arith.constant 1 : index
    %c0_13 = arith.constant 0 : index
    %21 = vector.load %arg7[%c1_12, %c0_13] : memref<3x256xf32, #tpu.memory_space<vmem>>, vector<1x256xf32>
    %c2_14 = arith.constant 2 : index
    %c0_15 = arith.constant 0 : index
    %22 = vector.load %arg7[%c2_14, %c0_15] : memref<3x256xf32, #tpu.memory_space<vmem>>, vector<1x256xf32>
    %c0_16 = arith.constant 0 : index
    %c0_17 = arith.constant 0 : index
    %23 = vector.load %arg5[%c0_16, %c0_17] : memref<384x128xbf16, #tpu.memory_space<vmem>>, vector<128x128xbf16>
    %c128 = arith.constant 128 : index
    %c0_18 = arith.constant 0 : index
    %24 = vector.load %arg5[%c128, %c0_18] : memref<384x128xbf16, #tpu.memory_space<vmem>>, vector<128x128xbf16>
    %c256 = arith.constant 256 : index
    %c0_19 = arith.constant 0 : index
    %25 = vector.load %arg5[%c256, %c0_19] : memref<384x128xbf16, #tpu.memory_space<vmem>>, vector<128x128xbf16>
    %c0_20 = arith.constant 0 : index
    %c0_21 = arith.constant 0 : index
    %26 = vector.load %arg2[%c0_20, %c0_21] : memref<128x128xbf16, #tpu.memory_space<vmem>>, vector<128x128xbf16>
    %cst = arith.constant dense<0.000000e+00> : vector<8x128xf32>
    %27 = tpu.matmul %11, %26, %cst {dimension_numbers = #tpu.dot_dimension_numbers<[1], [0], [0], [1], [0, 0, 1, 1], [], []>} : vector<8x128xbf16>, vector<128x128xbf16>, vector<8x128xf32> -> vector<8x128xf32>
    %28 = vector.broadcast %12 : vector<1x128xf32> to vector<8x128xf32>
    %29 = arith.addf %27, %28 : vector<8x128xf32>
    %cst_22 = arith.constant dense<0.000000e+00> : vector<8xf32>
    %30 = vector.multi_reduction <add>, %29, %cst_22 [1] : vector<8x128xf32> to vector<8xf32>
    %31 = vector.shape_cast %30 : vector<8xf32> to vector<8x1xf32>
    %cst_23 = arith.constant 1.280000e+02 : f32
    %32 = vector.broadcast %cst_23 : f32 to vector<8x1xf32>
    %33 = arith.divf %31, %32 : vector<8x1xf32>
    %34 = arith.mulf %29, %29 : vector<8x128xf32>
    %cst_24 = arith.constant dense<0.000000e+00> : vector<8xf32>
    %35 = vector.multi_reduction <add>, %34, %cst_24 [1] : vector<8x128xf32> to vector<8xf32>
    %36 = vector.shape_cast %35 : vector<8xf32> to vector<8x1xf32>
    %cst_25 = arith.constant 1.280000e+02 : f32
    %37 = vector.broadcast %cst_25 : f32 to vector<8x1xf32>
    %38 = arith.divf %36, %37 : vector<8x1xf32>
    %39 = arith.mulf %33, %33 : vector<8x1xf32>
    %40 = arith.subf %38, %39 : vector<8x1xf32>
    %cst_26 = arith.constant 0.000000e+00 : f32
    %41 = vector.broadcast %cst_26 : f32 to vector<8x1xf32>
    %42 = arith.maximumf %40, %41 : vector<8x1xf32>
    %43 = vector.broadcast %33 : vector<8x1xf32> to vector<8x128xf32>
    %44 = arith.subf %29, %43 : vector<8x128xf32>
    %cst_27 = arith.constant 9.99999974E-6 : f32
    %45 = vector.broadcast %cst_27 : f32 to vector<8x1xf32>
    %46 = arith.addf %42, %45 : vector<8x1xf32>
    %47 = math.rsqrt %46 : vector<8x1xf32>
    %48 = vector.broadcast %47 : vector<8x1xf32> to vector<8x128xf32>
    %49 = arith.mulf %44, %48 : vector<8x128xf32>
    %50 = vector.broadcast %13 : vector<1x128xf32> to vector<8x128xf32>
    %51 = arith.mulf %49, %50 : vector<8x128xf32>
    %52 = vector.broadcast %14 : vector<1x128xf32> to vector<8x128xf32>
    %53 = arith.addf %51, %52 : vector<8x128xf32>
    %cst_28 = arith.constant 0.000000e+00 : f32
    %54 = vector.broadcast %cst_28 : f32 to vector<8x128xf32>
    %55 = arith.maximumf %53, %54 : vector<8x128xf32>
    %56 = arith.truncf %55 : vector<8x128xf32> to vector<8x128xbf16>
    %c0_29 = arith.constant 0 : index
    %c0_30 = arith.constant 0 : index
    %57 = vector.load %arg3[%c0_29, %c0_30] : memref<128x256xbf16, #tpu.memory_space<vmem>>, vector<128x256xbf16>
    %cst_31 = arith.constant dense<0.000000e+00> : vector<8x256xf32>
    %58 = tpu.matmul %56, %57, %cst_31 {dimension_numbers = #tpu.dot_dimension_numbers<[1], [0], [0], [1], [0, 0, 1, 1], [], []>} : vector<8x128xbf16>, vector<128x256xbf16>, vector<8x256xf32> -> vector<8x256xf32>
    %59 = vector.broadcast %20 : vector<1x256xf32> to vector<8x256xf32>
    %60 = arith.addf %58, %59 : vector<8x256xf32>
    %cst_32 = arith.constant dense<0.000000e+00> : vector<8xf32>
    %61 = vector.multi_reduction <add>, %60, %cst_32 [1] : vector<8x256xf32> to vector<8xf32>
    %62 = vector.shape_cast %61 : vector<8xf32> to vector<8x1xf32>
    %cst_33 = arith.constant 2.560000e+02 : f32
    %63 = vector.broadcast %cst_33 : f32 to vector<8x1xf32>
    %64 = arith.divf %62, %63 : vector<8x1xf32>
    %65 = arith.mulf %60, %60 : vector<8x256xf32>
    %cst_34 = arith.constant dense<0.000000e+00> : vector<8xf32>
    %66 = vector.multi_reduction <add>, %65, %cst_34 [1] : vector<8x256xf32> to vector<8xf32>
    %67 = vector.shape_cast %66 : vector<8xf32> to vector<8x1xf32>
    %cst_35 = arith.constant 2.560000e+02 : f32
    %68 = vector.broadcast %cst_35 : f32 to vector<8x1xf32>
    %69 = arith.divf %67, %68 : vector<8x1xf32>
    %70 = arith.mulf %64, %64 : vector<8x1xf32>
    %71 = arith.subf %69, %70 : vector<8x1xf32>
    %cst_36 = arith.constant 0.000000e+00 : f32
    %72 = vector.broadcast %cst_36 : f32 to vector<8x1xf32>
    %73 = arith.maximumf %71, %72 : vector<8x1xf32>
    %74 = vector.broadcast %64 : vector<8x1xf32> to vector<8x256xf32>
    %75 = arith.subf %60, %74 : vector<8x256xf32>
    %cst_37 = arith.constant 9.99999974E-6 : f32
    %76 = vector.broadcast %cst_37 : f32 to vector<8x1xf32>
    %77 = arith.addf %73, %76 : vector<8x1xf32>
    %78 = math.rsqrt %77 : vector<8x1xf32>
    %79 = vector.broadcast %78 : vector<8x1xf32> to vector<8x256xf32>
    %80 = arith.mulf %75, %79 : vector<8x256xf32>
    %81 = vector.broadcast %21 : vector<1x256xf32> to vector<8x256xf32>
    %82 = arith.mulf %80, %81 : vector<8x256xf32>
    %83 = vector.broadcast %22 : vector<1x256xf32> to vector<8x256xf32>
    %84 = arith.addf %82, %83 : vector<8x256xf32>
    %cst_38 = arith.constant 0.000000e+00 : f32
    %85 = vector.broadcast %cst_38 : f32 to vector<8x256xf32>
    %86 = arith.maximumf %84, %85 : vector<8x256xf32>
    %87 = arith.truncf %86 : vector<8x256xf32> to vector<8x256xbf16>
    %c0_39 = arith.constant 0 : index
    %c0_40 = arith.constant 0 : index
    %88 = vector.load %arg4[%c0_39, %c0_40] : memref<256x128xbf16, #tpu.memory_space<vmem>>, vector<256x128xbf16>
    %cst_41 = arith.constant dense<0.000000e+00> : vector<8x128xf32>
    %89 = tpu.matmul %87, %88, %cst_41 {dimension_numbers = #tpu.dot_dimension_numbers<[1], [0], [0], [1], [0, 0, 1, 1], [], []>} : vector<8x256xbf16>, vector<256x128xbf16>, vector<8x128xf32> -> vector<8x128xf32>
    %90 = vector.broadcast %15 : vector<1x128xf32> to vector<8x128xf32>
    %91 = arith.addf %89, %90 : vector<8x128xf32>
    %cst_42 = arith.constant dense<0.000000e+00> : vector<8xf32>
    %92 = vector.multi_reduction <add>, %91, %cst_42 [1] : vector<8x128xf32> to vector<8xf32>
    %93 = vector.shape_cast %92 : vector<8xf32> to vector<8x1xf32>
    %cst_43 = arith.constant 1.280000e+02 : f32
    %94 = vector.broadcast %cst_43 : f32 to vector<8x1xf32>
    %95 = arith.divf %93, %94 : vector<8x1xf32>
    %96 = arith.mulf %91, %91 : vector<8x128xf32>
    %cst_44 = arith.constant dense<0.000000e+00> : vector<8xf32>
    %97 = vector.multi_reduction <add>, %96, %cst_44 [1] : vector<8x128xf32> to vector<8xf32>
    %98 = vector.shape_cast %97 : vector<8xf32> to vector<8x1xf32>
    %cst_45 = arith.constant 1.280000e+02 : f32
    %99 = vector.broadcast %cst_45 : f32 to vector<8x1xf32>
    %100 = arith.divf %98, %99 : vector<8x1xf32>
    %101 = arith.mulf %95, %95 : vector<8x1xf32>
    %102 = arith.subf %100, %101 : vector<8x1xf32>
    %cst_46 = arith.constant 0.000000e+00 : f32
    %103 = vector.broadcast %cst_46 : f32 to vector<8x1xf32>
    %104 = arith.maximumf %102, %103 : vector<8x1xf32>
    %105 = vector.broadcast %95 : vector<8x1xf32> to vector<8x128xf32>
    %106 = arith.subf %91, %105 : vector<8x128xf32>
    %cst_47 = arith.constant 9.99999974E-6 : f32
    %107 = vector.broadcast %cst_47 : f32 to vector<8x1xf32>
    %108 = arith.addf %104, %107 : vector<8x1xf32>
    %109 = math.rsqrt %108 : vector<8x1xf32>
    %110 = vector.broadcast %109 : vector<8x1xf32> to vector<8x128xf32>
    %111 = arith.mulf %106, %110 : vector<8x128xf32>
    %112 = vector.broadcast %16 : vector<1x128xf32> to vector<8x128xf32>
    %113 = arith.mulf %111, %112 : vector<8x128xf32>
    %114 = vector.broadcast %17 : vector<1x128xf32> to vector<8x128xf32>
    %115 = arith.addf %113, %114 : vector<8x128xf32>
    %cst_48 = arith.constant 0.000000e+00 : f32
    %116 = vector.broadcast %cst_48 : f32 to vector<8x128xf32>
    %117 = arith.maximumf %115, %116 : vector<8x128xf32>
    %118 = arith.truncf %117 : vector<8x128xf32> to vector<8x128xbf16>
    %cst_49 = arith.constant dense<0.000000e+00> : vector<8x128xf32>
    %119 = tpu.matmul %118, %23, %cst_49 {dimension_numbers = #tpu.dot_dimension_numbers<[1], [0], [0], [1], [0, 0, 1, 1], [], []>} : vector<8x128xbf16>, vector<128x128xbf16>, vector<8x128xf32> -> vector<8x128xf32>
    %120 = vector.broadcast %18 : vector<1x128xf32> to vector<8x128xf32>
    %121 = arith.addf %119, %120 : vector<8x128xf32>
    %cst_50 = arith.constant 0.000000e+00 : f32
    %122 = vector.broadcast %cst_50 : f32 to vector<8x128xf32>
    %123 = arith.maximumf %121, %122 : vector<8x128xf32>
    %124 = arith.truncf %123 : vector<8x128xf32> to vector<8x128xbf16>
    %cst_51 = arith.constant dense<0.000000e+00> : vector<8x128xf32>
    %125 = tpu.matmul %124, %24, %cst_51 {dimension_numbers = #tpu.dot_dimension_numbers<[1], [0], [0], [1], [0, 0, 1, 1], [], []>} : vector<8x128xbf16>, vector<128x128xbf16>, vector<8x128xf32> -> vector<8x128xf32>
    %126 = vector.broadcast %19 : vector<1x128xf32> to vector<8x128xf32>
    %127 = arith.addf %125, %126 : vector<8x128xf32>
    %c32_i32 = arith.constant 32 : i32
    %128 = vector.broadcast %c32_i32 : i32 to vector<8x128xi32>
    %129 = arith.cmpi sge, %1, %128 : vector<8x128xi32>
    %c96_i32 = arith.constant 96 : i32
    %130 = vector.broadcast %c96_i32 : i32 to vector<8x128xi32>
    %131 = arith.cmpi slt, %1, %130 : vector<8x128xi32>
    %132 = arith.andi %129, %131 : vector<8x128xi1>
    %133 = arith.extui %132 : vector<8x128xi1> to vector<8x128xi32>
    %134 = arith.sitofp %133 : vector<8x128xi32> to vector<8x128xf32>
    %cst_52 = arith.constant -1.000000e+30 : f32
    %135 = vector.broadcast %cst_52 : f32 to vector<8x128xf32>
    %136 = arith.select %132, %127, %135 : vector<8x128xi1>, vector<8x128xf32>
    %cst_53 = arith.constant dense<0xFF800000> : vector<8xf32>
    %137 = vector.multi_reduction <maximumf>, %136, %cst_53 [1] : vector<8x128xf32> to vector<8xf32>
    %138 = vector.shape_cast %137 : vector<8xf32> to vector<8x1xf32>
    %139 = vector.broadcast %138 : vector<8x1xf32> to vector<8x128xf32>
    %140 = arith.subf %127, %139 : vector<8x128xf32>
    %cst_54 = arith.constant -1.000000e+30 : f32
    %141 = vector.broadcast %cst_54 : f32 to vector<8x128xf32>
    %142 = arith.select %132, %140, %141 : vector<8x128xi1>, vector<8x128xf32>
    %143 = math.exp %142 : vector<8x128xf32>
    %144 = arith.truncf %143 : vector<8x128xf32> to vector<8x128xbf16>
    %cst_55 = arith.constant dense<0.000000e+00> : vector<8x128xf32>
    %145 = tpu.matmul %144, %25, %cst_55 {dimension_numbers = #tpu.dot_dimension_numbers<[1], [0], [0], [1], [0, 0, 1, 1], [], []>} : vector<8x128xbf16>, vector<128x128xbf16>, vector<8x128xf32> -> vector<8x128xf32>
    %cst_56 = arith.constant 1.000000e+00 : f32
    %146 = vector.broadcast %cst_56 : f32 to vector<8x128xf32>
    %147 = arith.subf %146, %134 : vector<8x128xf32>
    %148 = arith.addf %145, %147 : vector<8x128xf32>
    %cst_57 = arith.constant 1.000000e-30 : f32
    %149 = vector.broadcast %cst_57 : f32 to vector<8x128xf32>
    %150 = arith.maximumf %148, %149 : vector<8x128xf32>
    %151 = tpu.reciprocal %150 {approx = true} : vector<8x128xf32> -> vector<8x128xf32>
    %152 = arith.mulf %143, %151 : vector<8x128xf32>
    %153 = arith.addf %121, %152 : vector<8x128xf32>
    %c0_58 = arith.constant 0 : index
    %c0_59 = arith.constant 0 : index
    %154 = vector.load %arg8[%c0_58, %c0_59] : memref<8x128xf32, #tpu.memory_space<vmem>>, vector<8x128xf32>
    tpu.vector_store %arg8[%c0_58, %c0_59], %153 {strides = array<i32>} : memref<8x128xf32, #tpu.memory_space<vmem>>, vector<8x128xf32>,
    return
  }
  func.func @transform_0(%arg0: i32) -> (i32, i32) {
    %c0_i32 = arith.constant 0 : i32
    %c0_i32_0 = arith.constant 0 : i32
    return %arg0, %c0_i32 : i32, i32
  }
  func.func @transform_1(%arg0: i32) -> (i32, i32) {
    %c0_i32 = arith.constant 0 : i32
    %c0_i32_0 = arith.constant 0 : i32
    %c0_i32_1 = arith.constant 0 : i32
    return %c0_i32, %c0_i32_0 : i32, i32
  }
  func.func @transform_2(%arg0: i32) -> (i32, i32) {
    %c0_i32 = arith.constant 0 : i32
    %c0_i32_0 = arith.constant 0 : i32
    %c0_i32_1 = arith.constant 0 : i32
    return %c0_i32, %c0_i32_0 : i32, i32
  }
  func.func @transform_3(%arg0: i32) -> (i32, i32) {
    %c0_i32 = arith.constant 0 : i32
    %c0_i32_0 = arith.constant 0 : i32
    %c0_i32_1 = arith.constant 0 : i32
    return %c0_i32, %c0_i32_0 : i32, i32
  }
  func.func @transform_4(%arg0: i32) -> (i32, i32) {
    %c0_i32 = arith.constant 0 : i32
    %c0_i32_0 = arith.constant 0 : i32
    %c0_i32_1 = arith.constant 0 : i32
    return %c0_i32, %c0_i32_0 : i32, i32
  }
  func.func @transform_5(%arg0: i32) -> (i32, i32) {
    %c0_i32 = arith.constant 0 : i32
    %c0_i32_0 = arith.constant 0 : i32
    %c0_i32_1 = arith.constant 0 : i32
    return %c0_i32, %c0_i32_0 : i32, i32
  }
  func.func @transform_6(%arg0: i32) -> (i32, i32) {
    %c0_i32 = arith.constant 0 : i32
    %c0_i32_0 = arith.constant 0 : i32
    %c0_i32_1 = arith.constant 0 : i32
    return %c0_i32, %c0_i32_0 : i32, i32
  }
  func.func @transform_7(%arg0: i32) -> (i32, i32) {
    %c0_i32 = arith.constant 0 : i32
    %c0_i32_0 = arith.constant 0 : i32
    return %arg0, %c0_i32 : i32, i32
  }
}

</mosaic_0001>

<bundles_post_ra>
// kernel: _forward.1
= control target key start
LH: loop header
LB: loop body
LE: loop exit
PB: predicated region body
PF: predicated region fallthrough
CT: control target
= control target key end

     0   :  { %12 = vsyncpa [#allocation3], 0  ;;  %s1622_s0 = inlined_call_operand.vmem [shape: f32[8,128], index: 0, kind: input, shape index: {}]   ;;  %s1623_s1 = inlined_call_operand.hbm [shape: bf16[128,128], index: 1, kind: input, shape index: {}]   ;;  %s1624_s2 = inlined_call_operand.hbm [shape: bf16[128,256], index: 2, kind: input, shape index: {}]   ;;  %s1625_s3 = inlined_call_operand.hbm [shape: bf16[256,128], index: 3, kind: input, shape index: {}]   ;;  %s1626_s4 = inlined_call_operand.hbm [shape: bf16[384,128], index: 4, kind: input, shape index: {}]   ;;  %s1627_s5 = inlined_call_operand.vmem [shape: f32[8,128], index: 5, kind: input, shape index: {}]   ;;  %s1628_s6 = inlined_call_operand.vmem [shape: f32[3,256], index: 6, kind: input, shape index: {}]   ;;  %s1629_s7 = inlined_call_operand.vmem [shape: f32[8,128], index: 7, kind: output, shape index: {}]  }
   0x1   :  { %13 = vsyncpa [#allocation5], 0 }
   0x2   :  { %14 = vsyncpa [#allocation8], 0  ;;  %s1392_s24 = smov [#allocation4]   ;;  %s1298_s28 = scalar_lea.hbm %s1624_s2, 2048 }
   0x3   :  { %s34_s25 = sshll.u32 %s1392_s24, 4  ;;  %p1299_p0 = scmp.ne.s32.totalorder %s1624_s2, %s1298_s28  ;;  %s35_s25 = int_to_ptr.vmem [resolvable:$true] %s34_s25 }
   0x4   :  { %p1302_p1 = scmp.lt.u32.totalorder %s1298_s28, %s1624_s2 }
   0x6   :  { %p1304_p2 = pnand %p1302_p1, %p1299_p0 }
   0x8   :  { %1307 = shalt.err (!%p1304_p2)
}
   0x9   :  { %s1308_s10 = scalar_lea.vmem %s35_s25, 2048  ;;  %p1313_p4 = scmp.lt.s32.totalorder %s35_s25, %s35_s25 }
   0xa   :  { %p1309_p3 = scmp.ne.s32.totalorder %s35_s25, %s1308_s10  ;;  %p1314_p5 = scmp.lt.s32.totalorder %s1308_s10, %s1308_s10 }
   0xc   :  { %p1315_p6 = por %p1314_p5, %p1313_p4 }
   0xe   :  { %p1316_p7 = pnand %p1315_p6, %p1309_p3 }
  0x10   :  { %1319 = shalt.err (!%p1316_p7)
}
  0x11   :  { %s1393_s11 = smov 128   ;;  %s1394_s12 = smov 8  }
  0x12   :  { %40 = dma.hbm_to_vmem [thread:$0]  %s1624_s2, 2048, %s35_s25, [#allocation5], %s1393_s11, %s1393_s11, %s1394_s12  }
  0x13   :  { %s1395_s15 = smov [#allocation2]   ;;  %s1320_s19 = scalar_lea.hbm %s1623_s1, 1024 }
  0x14   :  { %s22_s16 = sshll.u32 %s1395_s15, 4  ;;  %p1321_p8 = scmp.ne.s32.totalorder %s1623_s1, %s1320_s19  ;;  %s23_s16 = int_to_ptr.vmem [resolvable:$true] %s22_s16 }
  0x15   :  { %p1324_p9 = scmp.lt.u32.totalorder %s1320_s19, %s1623_s1 }
  0x17   :  { %p1326_p10 = pnand %p1324_p9, %p1321_p8 }
  0x19   :  { %1329 = shalt.err (!%p1326_p10)
}
  0x1a   :  { %s1330_s24 = scalar_lea.vmem %s23_s16, 1024  ;;  %p1335_p12 = scmp.lt.s32.totalorder %s23_s16, %s23_s16 }
  0x1b   :  { %p1331_p11 = scmp.ne.s32.totalorder %s23_s16, %s1330_s24  ;;  %p1336_p13 = scmp.lt.s32.totalorder %s1330_s24, %s1330_s24 }
  0x1d   :  { %p1337_p0 = por %p1336_p13, %p1335_p12 }
  0x1f   :  { %p1338_p1 = pnand %p1337_p0, %p1331_p11 }
  0x21   :  { %1341 = shalt.err (!%p1338_p1)
}
  0x22   :  { %s1396_s2 = smov 64   ;;  %s1397_s25 = smov 4  }
  0x23   :  { %28 = dma.hbm_to_vmem [thread:$0]  %s1623_s1, 1024, %s23_s16, [#allocation3], %s1396_s2, %s1396_s2, %s1397_s25  }
  0x24   :  { %s1398_s28 = smov [#allocation6]   ;;  %s1399_s30 = smov [#allocation7]  }
  0x25   :  { %s46_s29 = sshll.u32 %s1398_s28, 4  ;;  %s58_s8 = sshll.u32 %s1399_s30, 4  ;;  %s47_s29 = int_to_ptr.vmem [resolvable:$true] %s46_s29  ;;  %s1471_s8 = int_to_ptr.vmem [resolvable:$true] %s58_s8 }
  0x26   :  { %s1342_s11 = scalar_lea.hbm %s1625_s3, 2048 }
  0x27   :  { %p1343_p2 = scmp.ne.s32.totalorder %s1625_s3, %s1342_s11  ;;  %p1346_p3 = scmp.lt.u32.totalorder %s1342_s11, %s1625_s3 }
  0x29   :  { %p1348_p4 = pnand %p1346_p3, %p1343_p2 }
  0x2b   :  { %1351 = shalt.err (!%p1348_p4)
}
  0x2c   :  { %s1352_s1 = scalar_lea.vmem %s47_s29, 2048  ;;  %p1357_p6 = scmp.lt.s32.totalorder %s47_s29, %s47_s29 }
  0x2d   :  { %p1353_p5 = scmp.ne.s32.totalorder %s47_s29, %s1352_s1  ;;  %p1358_p7 = scmp.lt.s32.totalorder %s1352_s1, %s1352_s1 }
  0x2f   :  { %p1359_p8 = por %p1358_p7, %p1357_p6 }
  0x31   :  { %p1360_p9 = pnand %p1359_p8, %p1353_p5 }
  0x33   :  { %1363 = shalt.err (!%p1360_p9)
}
  0x34   :  { %52 = dma.hbm_to_vmem [thread:$0]  %s1625_s3, 2048, %s47_s29, [#allocation5], %s1396_s2, %s1396_s2, %s1397_s25  }
  0x35   :  { %s1364_s20 = scalar_lea.hbm %s1626_s4, 3072 }
  0x36   :  { %p1365_p10 = scmp.ne.s32.totalorder %s1626_s4, %s1364_s20  ;;  %p1368_p11 = scmp.lt.u32.totalorder %s1364_s20, %s1626_s4 }
  0x38   :  { %p1370_p12 = pnand %p1368_p11, %p1365_p10 }
  0x3a   :  { %1373 = shalt.err (!%p1370_p12)
}
  0x3b   :  { %s1374_s26 = scalar_lea.vmem %s1471_s8, 3072  ;;  %p1379_p0 = scmp.lt.s32.totalorder %s1471_s8, %s1471_s8 }
  0x3c   :  { %p1375_p13 = scmp.ne.s32.totalorder %s1471_s8, %s1374_s26  ;;  %p1380_p1 = scmp.lt.s32.totalorder %s1374_s26, %s1374_s26 }
  0x3e   :  { %p1381_p2 = por %p1380_p1, %p1379_p0 }
  0x40   :  { %p1382_p3 = pnand %p1381_p2, %p1375_p13 }
  0x42   :  { %1385 = shalt.err (!%p1382_p3)
}
  0x43   :  { %64 = dma.hbm_to_vmem [thread:$0]  %s1626_s4, 3072, %s1471_s8, [#allocation8], %s1396_s2, %s1396_s2, %s1397_s25  }
  0x44   :  { %1386 = dma.done.wait [#allocation3], 1024  }
  0x45   :  { %1387 = vsyncadd [#allocation3], 4294966272 }
  0x46   :  { %1388 = dma.done.wait [#allocation5], 4096  }
  0x47   :  { %1389 = vsyncadd [#allocation5], 4294963200 }
  0x48   :  { %1390 = dma.done.wait [#allocation8], 3072  }
  0x49   :  { %1391 = vsyncadd [#allocation8], 4294964224  ;;  %v1400_v0 = vmov 49   ;;  %v1401_v1 = vmov 0.0   ;;  %v82_v2 = vld [vmem:[%s1622_s0] sm:$0xff]  ;;  %v1217_v6 = vld [vmem:[#allocation2 + $0x8] sm:$0xff]   ;;  %v83_v14 = vlaneseq }
  0x4a   :  { %1215 = vset.pattern.permute.xlu0 %v1400_v0  ;;  %1121 = vmatprep.subr.bf16.mxu0 %v1401_v1  ;;  %v1201_v3 = vtrunc.f32 %v82_v2  ;;  %v1216_v4 = vld [vmem:[#allocation2] sm:$0xff]   ;;  %v1218_v8 = vld [vmem:[#allocation2 + $0x10] sm:$0xff]   ;;  %v1219_v9 = vld [vmem:[#allocation2 + $0x18] sm:$0xff]   ;;  %vm1402_vm0 = vmmov 0   ;;  %v1403_v38 = vmov 0  }
  0x4b   :  { %1122 = vmatpush3.bf16.msra.mxu0 %v1216_v4  ;;  %1137 = vmatprep.mubr.msk.bf16.mxu0 %vm1402_vm0, %v1401_v1  ;;  %v1220_v10 = vld [vmem:[#allocation2 + $0x20] sm:$0xff]   ;;  %v1221_v11 = vld [vmem:[#allocation2 + $0x28] sm:$0xff]   ;;  %v1222_v12 = vld [vmem:[#allocation2 + $0x30] sm:$0xff]   ;;  %v1522_v15 = vand.u32 127, %v83_v14  ;;  %v309_v61 = vshrl.u32 %v83_v14, 7 }
  0x4c   :  { %v1202_v5 = vcvt.f32.s32 %v1201_v3  ;;  %1123 = vmatprep.subr.bf16.mxu0 %v1401_v1  ;;  %v1223_v13 = vld [vmem:[#allocation2 + $0x38] sm:$0xff]   ;;  %v1224_v20 = vld [vmem:[#allocation4 + $0x4] ss:$8 sps:$4 sm:$0xff]   ;;  %v990_v21 = vld [vmem:[%s1627_s5] ss:$0 sm:$0xff]  ;;  %430 = vmatprep.mubr.bf16.mxu1 %v1403_v38 }
  0x4d   :  { %398 = vmatprep.subr.bf16.mxu1 %v1224_v20  ;;  %v1226_v28 = vld [vmem:[#allocation4] ss:$8 sps:$4 sm:$0xff]   ;;  %v1227_v29 = vld [vmem:[#allocation4 + $0x14] ss:$8 sps:$4 sm:$0xff]   ;;  %v1229_v30 = vld [vmem:[#allocation4 + $0x10] ss:$8 sps:$4 sm:$0xff]  }
  0x4e   :  { %v86_v7 = vadd.s32 51, %v1202_v5  ;;  %399 = vmatpush1.bf16.msra.mxu1 %v1226_v28  ;;  %v1230_v31 = vld [vmem:[#allocation4 + $0x24] ss:$8 sps:$4 sm:$0xff]   ;;  %v1232_v32 = vld [vmem:[#allocation4 + $0x20] ss:$8 sps:$4 sm:$0xff]   ;;  %v1539_v62 = vsub.s32 0, %v309_v61 }
  0x4f   :  { %1124 = vmatpush3.bf16.msra.mxu0 %v1217_v6  ;;  %400 = vmatprep.subr.bf16.mxu1 %v1227_v29  ;;  %v1233_v33 = vld [vmem:[#allocation4 + $0x34] ss:$8 sps:$4 sm:$0xff]   ;;  %v1235_v34 = vld [vmem:[#allocation4 + $0x30] ss:$8 sps:$4 sm:$0xff]   ;;  %v1236_v35 = vld [vmem:[#allocation4 + $0x44] ss:$8 sps:$4 sm:$0xff]  }
  0x50   :  { %88 = vperm.xlu0 %1215, %v86_v7   ;;  %1125 = vmatprep.subr.bf16.mxu0 %v1401_v1  ;;  %v1238_v36 = vld [vmem:[#allocation4 + $0x40] ss:$8 sps:$4 sm:$0xff]   ;;  %v1239_v37 = vld [vmem:[#allocation4 + $0x54] ss:$8 sps:$4 sm:$0xff]   ;;  %v1241_v39 = vld [vmem:[#allocation4 + $0x50] ss:$8 sps:$4 sm:$0xff]  }
  0x51   :  { %v1242_v40 = vld [vmem:[#allocation4 + $0x64] ss:$8 sps:$4 sm:$0xff]   ;;  %v1244_v41 = vld [vmem:[#allocation4 + $0x60] ss:$8 sps:$4 sm:$0xff]   ;;  %v1245_v42 = vld [vmem:[#allocation4 + $0x74] ss:$8 sps:$4 sm:$0xff]  }
  0x52   :  { %401 = vmatpush1.bf16.msra.mxu1 %v1229_v30  ;;  %v1247_v43 = vld [vmem:[#allocation4 + $0x70] ss:$8 sps:$4 sm:$0xff]   ;;  %v999_v54 = vld [vmem:[%s1627_s5 + $0x1] ss:$0 sm:$0xff]  ;;  %v1000_v56 = vld [vmem:[%s1627_s5 + $0x2] ss:$0 sm:$0xff] }
  0x53   :  { %1126 = vmatpush3.bf16.msra.mxu0 %v1218_v8  ;;  %402 = vmatprep.subr.bf16.mxu1 %v1230_v31  ;;  %v103_v63 = vld [vmem:[%s1628_s6] ss:$4 sm:$0x3]  ;;  %v1544_v0 = vsub.s32 1, %v309_v61  ;;  %v1253_v20 = vld [vmem:[#allocation6 + $0x10] sm:$0xff]   ;;  %v1262_v29 = vld [vmem:[#allocation6 + $0x78] sm:$0xff]  }
  0x54   :  { %1127 = vmatprep.subr.bf16.mxu0 %v1401_v1  ;;  %v1248_v14 = vld [vmem:[#allocation6 + $0x40] sm:$0xff]   ;;  %v1261_v28 = vld [vmem:[#allocation6 + $0x30] sm:$0xff]   ;;  %v1263_v30 = vld [vmem:[#allocation6 + $0x38] sm:$0xff]   ;;  %vm873_vm2 = vcmp.ge.s32.totalorder %v1522_v15, 32  ;;  %vm874_vm3 = vcmp.lt.s32.totalorder %v1522_v15, 96 }
  0x55   :  { %v315_v3 = vrot.slane %v103_v63, %v1544_v0  ;;  %vm1605_vm4 = vmand %vm873_vm2, %vm874_vm3 }
  0x56   :  { %403 = vmatpush1.bf16.msra.mxu1 %v1232_v32 }
  0x57   :  { %1128 = vmatpush3.bf16.msra.mxu0 %v1219_v9  ;;  %404 = vmatprep.subr.bf16.mxu1 %v1233_v33 }
  0x58   :  { %1129 = vmatprep.subr.bf16.mxu0 %v1401_v1 }
  0x5a   :  { %405 = vmatpush1.bf16.msra.mxu1 %v1235_v34 }
  0x5b   :  { %1130 = vmatpush3.bf16.msra.mxu0 %v1220_v10  ;;  %406 = vmatprep.subr.bf16.mxu1 %v1236_v35 }
  0x5c   :  { %1131 = vmatprep.subr.bf16.mxu0 %v1401_v1 }
  0x5e   :  { %407 = vmatpush1.bf16.msra.mxu1 %v1238_v36 }
  0x5f   :  { %1132 = vmatpush3.bf16.msra.mxu0 %v1221_v11  ;;  %408 = vmatprep.subr.bf16.mxu1 %v1239_v37 }
  0x60   :  { %1133 = vmatprep.subr.bf16.mxu0 %v1401_v1 }
  0x62   :  { %409 = vmatpush1.bf16.msra.mxu1 %v1241_v39  ;;  %v988_v39 = vld [vmem:[%s1628_s6 + $0x1] ss:$4 sm:$0x3] }
  0x63   :  { %1134 = vmatpush3.bf16.msra.mxu0 %v1222_v12  ;;  %410 = vmatprep.subr.bf16.mxu1 %v1242_v40  ;;  %v989_v40 = vld [vmem:[%s1628_s6 + $0x2] ss:$4 sm:$0x3] }
  0x64   :  { %1135 = vmatprep.subr.bf16.mxu0 %v1401_v1 }
  0x66   :  { %411 = vmatpush1.bf16.msra.mxu1 %v1244_v41 }
  0x67   :  { %1136 = vmatpush3.bf16.msra.mxu0 %v1223_v13  ;;  %412 = vmatprep.subr.bf16.mxu1 %v1245_v42 }
  0x68   :  { %1072 = vmatprep.subr.bf16.mxu0 %v1248_v14  ;;  %v1275_v14 = vld [vmem:[#allocation7 + $0x58] sm:$0xff]  }
  0x6a   :  { %413 = vmatpush1.bf16.msra.mxu1 %v1247_v43  ;;  %v463_v43 = vrot.slane %v988_v39, %v1539_v62 }
  0x6b   :  { %1141 = vmatprep.subr.bf16.mxu1 %v1401_v1 }
  0xcf   :  { %v89_v16 = vpop.permute.xlu0 %88 }
  0xd0   :  { %vm90_vm1 = vcmp.eq.s32.totalorder %v1522_v15, %v89_v16  ;;  %v1249_v16 = vld [vmem:[#allocation6] sm:$0xff]   ;;  %v1285_v15 = vld [vmem:[#allocation7 + $0xa8] sm:$0xff]  }
  0xd1   :  { %v987_v17 = vsel %vm90_vm1, 1.0, %v1401_v1 }
  0xd2   :  { %v93_v18 = vadd.f32 %v987_v17, %v82_v2  ;;  %v311_v2 = vrot.slane %v103_v63, %v1539_v62  ;;  %v1250_v17 = vld [vmem:[#allocation6 + $0x48] sm:$0xff]  }
  0xd4   :  { %v94_v19 = vpack.c.bf16 %v93_v18, %v93_v18  ;;  %v1251_v18 = vld [vmem:[#allocation6 + $0x8] sm:$0xff]  }
  0xd6   :  { %1138 = vmatmul.mubr.bf16.vlgmr.msra.gmra.mrb[0].mxu0 %v94_v19  ;;  %v1252_v19 = vld [vmem:[#allocation6 + $0x50] sm:$0xff]  }
  0xd7   :  { %1073 = vmatpush3.bf16.msra.mxu0 %v1249_v16  ;;  %v1276_v16 = vld [vmem:[#allocation7 + $0x60] sm:$0xff]  }
  0xd8   :  { %1074 = vmatprep.subr.bf16.mxu0 %v1250_v17  ;;  %v1277_v17 = vld [vmem:[#allocation7 + $0x68] sm:$0xff]  }
  0xdb   :  { %1075 = vmatpush3.bf16.msra.mxu0 %v1251_v18 }
  0xdc   :  { %1076 = vmatprep.subr.bf16.mxu0 %v1252_v19 }
  0xdf   :  { %1077 = vmatpush3.bf16.msra.mxu0 %v1253_v20 }
 0x1a9   :  { %v258_v22 = vpop.f32.mrb[0].mxu0 }
 0x1aa   :  { %v259_v23 = vadd.f32 %v990_v21, %v258_v22  ;;  %v1139_v24 = vpop.f32.mrb[1].mxu0  ;;  %v1254_v21 = vld [vmem:[#allocation6 + $0x58] sm:$0xff]  }
 0x1ab   :  { %v261_v25 = vpop.f32.mrb[2].mxu0  ;;  %v1255_v22 = vld [vmem:[#allocation6 + $0x18] sm:$0xff]   ;;  %1078 = vmatprep.subr.bf16.mxu0 %v1254_v21  ;;  %v1257_v24 = vld [vmem:[#allocation6 + $0x20] sm:$0xff]  }
 0x1ac   :  { %264 = vadd.xlane.f32.xlu0 %v259_v23  ;;  %v1140_v26 = vpop.f32.mrb[3].mxu0  ;;  %v268_v27 = vmul.f32 %v259_v23, %v259_v23  ;;  %1079 = vmatpush3.bf16.msra.mxu0 %v1255_v22  ;;  %v1258_v25 = vld [vmem:[#allocation6 + $0x68] sm:$0xff]  }
 0x1ad   :  { %v1259_v26 = vld [vmem:[#allocation6 + $0x28] sm:$0xff]  }
 0x1ae   :  { %269 = vadd.xlane.f32.xlu1 %v268_v27  ;;  %v1260_v27 = vld [vmem:[#allocation6 + $0x70] sm:$0xff]  }
 0x239   :  { %v265_v44 = vpop.xlane.xlu0 %264 }
 0x23a   :  { %v267_v45 = vmul.f32 0.0078125, %v265_v44  ;;  %v467_v44 = vrot.slane %v988_v39, %v1544_v0 }
 0x23b   :  { %v270_v46 = vpop.xlane.xlu1 %269 }
 0x23c   :  { %v272_v47 = vmul.f32 %v267_v45, %v267_v45  ;;  %v271_v48 = vmul.f32 0.0078125, %v270_v46  ;;  %v275_v52 = vsub.f32 %v259_v23, %v267_v45  ;;  %v1256_v23 = vld [vmem:[#allocation6 + $0x60] sm:$0xff]  }
 0x23d   :  { %1080 = vmatprep.subr.bf16.mxu0 %v1256_v23 }
 0x23e   :  { %v273_v49 = vsub.f32 %v271_v48, %v272_v47  ;;  %1081 = vmatpush3.bf16.msra.mxu0 %v1257_v24  ;;  %v476_v47 = vrot.slane %v989_v40, %v1539_v62  ;;  %v480_v48 = vrot.slane %v989_v40, %v1544_v0 }
 0x23f   :  { %1082 = vmatprep.subr.bf16.mxu0 %v1258_v25 }
 0x240   :  { %v274_v50 = vmax.f32 %v273_v49, 0.0 }
 0x242   :  { %v276_v51 = vadd.f32 1e-05, %v274_v50  ;;  %1083 = vmatpush3.bf16.msra.mxu0 %v1259_v26 }
 0x243   :  { %1084 = vmatprep.subr.bf16.mxu0 %v1260_v27 }
 0x244   :  { %1288 = vrsqrt.f32 %v276_v51 }
 0x246   :  { %1085 = vmatpush3.bf16.msra.mxu0 %v1261_v28  ;;  %v1034_v28 = vld [vmem:[%s1627_s5 + $0x4] ss:$0 sm:$0xff] }
 0x247   :  { %1086 = vmatprep.subr.bf16.mxu0 %v1262_v29 }
 0x24a   :  { %1087 = vmatpush3.bf16.msra.mxu0 %v1263_v30  ;;  %v1035_v30 = vld [vmem:[%s1627_s5 + $0x5] ss:$0 sm:$0xff] }
 0x24b   :  { %1161 = vmatprep.subr.bf16.mxu0 %v1401_v1 }
 0x24e   :  { %v1289_v53 = vpop.eup %1288 }
 0x24f   :  { %v278_v55 = vmul.f32 %v1289_v53, %v275_v52 }
 0x251   :  { %v283_v57 = vmul.f32 %v999_v54, %v278_v55 }
 0x253   :  { %v288_v58 = vadd.f32 %v1000_v56, %v283_v57 }
 0x255   :  { %v289_v59 = vmax.f32 %v288_v58, 0.0 }
 0x257   :  { %v290_v60 = vpack.c.bf16 %v289_v59, %v289_v59  ;;  %v1017_v59 = vld [vmem:[%s1627_s5 + $0x3] ss:$0 sm:$0xff] }
 0x259   :  { %431 = vmatmul.mubr.bf16.vlgmr.msra.gmra.mrb[0].mxu1 %v290_v60 }
 0x25a   :  { %1157 = vmatprep.mubr.msk.bf16.mxu1 %vm1402_vm0, %v1401_v1 }
 0x32c   :  { %v432_v4 = vpop.f32.mrb[0].mxu1 }
 0x32d   :  { %v1548_v5 = vadd.f32 %v432_v4, %v311_v2  ;;  %v434_v6 = vpop.f32.mrb[1].mxu1  ;;  %v1265_v4 = vld [vmem:[#allocation7 + $0x8] sm:$0xff]  }
 0x32e   :  { %v435_v7 = vadd.f32 %v434_v6, %v315_v3  ;;  %v436_v8 = vpop.f32.mrb[2].mxu1  ;;  %v1264_v3 = vld [vmem:[#allocation7] sm:$0xff]   ;;  %v1267_v6 = vld [vmem:[#allocation7 + $0x18] sm:$0xff]  }
 0x32f   :  { %v437_v9 = vpop.f32.mrb[3].mxu1  ;;  %v444_v11 = vmul.f32 %v1548_v5, %v1548_v5  ;;  %1142 = vmatpush3.bf16.msra.mxu1 %v1264_v3  ;;  %v1269_v8 = vld [vmem:[#allocation7 + $0x28] sm:$0xff]   ;;  %v1054_v3 = vsel %vm1605_vm4, 1.0, %v1401_v1 }
 0x330   :  { %v439_v10 = vadd.f32 %v435_v7, %v1548_v5  ;;  %v445_v12 = vmul.f32 %v435_v7, %v435_v7  ;;  %1143 = vmatprep.subr.bf16.mxu1 %v1401_v1  ;;  %v1270_v9 = vld [vmem:[#allocation7 + $0x30] sm:$0xff]  }
 0x332   :  { %440 = vadd.xlane.f32.xlu1 %v439_v10  ;;  %v446_v13 = vadd.f32 %v445_v12, %v444_v11  ;;  %v1271_v10 = vld [vmem:[#allocation7 + $0x38] sm:$0xff]   ;;  %v1272_v11 = vld [vmem:[#allocation7 + $0x40] sm:$0xff]   ;;  %v1273_v12 = vld [vmem:[#allocation7 + $0x48] sm:$0xff]  }
 0x333   :  { %1144 = vmatpush3.bf16.msra.mxu1 %v1265_v4  ;;  %v886_v4 = vsub.f32 1.0, %v1054_v3 }
 0x334   :  { %1145 = vmatprep.subr.bf16.mxu1 %v1401_v1 }
 0x336   :  { %447 = vadd.xlane.f32.xlu1 %v446_v13  ;;  %v1274_v13 = vld [vmem:[#allocation7 + $0x50] sm:$0xff]  }
 0x3bf   :  { %v441_v31 = vpop.xlane.xlu1 %440 }
 0x3c0   :  { %v443_v32 = vmul.f32 0.00390625, %v441_v31 }
 0x3c2   :  { %v450_v34 = vmul.f32 %v443_v32, %v443_v32  ;;  %v453_v41 = vsub.f32 %v1548_v5, %v443_v32  ;;  %v454_v42 = vsub.f32 %v435_v7, %v443_v32  ;;  %v1266_v5 = vld [vmem:[#allocation7 + $0x10] sm:$0xff]   ;;  %v1268_v7 = vld [vmem:[#allocation7 + $0x20] sm:$0xff]  }
 0x3c3   :  { %v448_v33 = vpop.xlane.xlu1 %447  ;;  %1146 = vmatpush3.bf16.msra.mxu1 %v1266_v5 }
 0x3c4   :  { %v449_v35 = vmul.f32 0.00390625, %v448_v33  ;;  %1147 = vmatprep.subr.bf16.mxu1 %v1401_v1 }
 0x3c6   :  { %v451_v36 = vsub.f32 %v449_v35, %v450_v34  ;;  %v1278_v35 = vld [vmem:[#allocation7 + $0x70] sm:$0xff]  }
 0x3c7   :  { %1148 = vmatpush3.bf16.msra.mxu1 %v1267_v6 }
 0x3c8   :  { %v452_v37 = vmax.f32 %v451_v36, 0.0  ;;  %1149 = vmatprep.subr.bf16.mxu1 %v1401_v1  ;;  %v1279_v36 = vld [vmem:[#allocation7 + $0x78] sm:$0xff]  }
 0x3ca   :  { %v455_v38 = vadd.f32 1e-05, %v452_v37  ;;  %v1036_v37 = vld [vmem:[%s1627_s5 + $0x6] ss:$0 sm:$0xff] }
 0x3cb   :  { %1150 = vmatpush3.bf16.msra.mxu1 %v1268_v7 }
 0x3cc   :  { %1290 = vrsqrt.f32 %v455_v38  ;;  %1151 = vmatprep.subr.bf16.mxu1 %v1401_v1 }
 0x3cf   :  { %1152 = vmatpush3.bf16.msra.mxu1 %v1269_v8 }
 0x3d0   :  { %1153 = vmatprep.subr.bf16.mxu1 %v1401_v1 }
 0x3d3   :  { %1154 = vmatpush3.bf16.msra.mxu1 %v1270_v9 }
 0x3d4   :  { %1155 = vmatprep.subr.bf16.mxu1 %v1401_v1 }
 0x3d6   :  { %v1291_v45 = vpop.eup %1290 }
 0x3d7   :  { %v458_v46 = vmul.f32 %v1291_v45, %v454_v42  ;;  %v457_v49 = vmul.f32 %v1291_v45, %v453_v41  ;;  %1156 = vmatpush3.bf16.msra.mxu1 %v1271_v10  ;;  %v1280_v45 = vld [vmem:[#allocation7 + $0x80] sm:$0xff]  }
 0x3d8   :  { %1181 = vmatprep.subr.bf16.mxu1 %v1401_v1 }
 0x3d9   :  { %v471_v50 = vmul.f32 %v467_v44, %v458_v46  ;;  %v470_v51 = vmul.f32 %v463_v43, %v457_v49  ;;  %v1281_v46 = vld [vmem:[#allocation7 + $0x88] sm:$0xff]   ;;  %v1045_v49 = vld [vmem:[%s1627_s5 + $0x7] ss:$0 sm:$0xff] }
 0x3db   :  { %v484_v52 = vadd.f32 %v480_v48, %v471_v50  ;;  %v483_v53 = vadd.f32 %v476_v47, %v470_v51  ;;  %v1282_v47 = vld [vmem:[#allocation7 + $0x90] sm:$0xff]   ;;  %v1283_v48 = vld [vmem:[#allocation7 + $0x98] sm:$0xff]  }
 0x3dd   :  { %v486_v54 = vmax.f32 %v484_v52, 0.0  ;;  %v485_v55 = vmax.f32 %v483_v53, 0.0 }
 0x3df   :  { %v488_v56 = vpack.c.bf16 %v486_v54, %v486_v54  ;;  %v487_v57 = vpack.c.bf16 %v485_v55, %v485_v55 }
 0x3e1   :  { %653 = vmatprep.mubr.bf16.mxu0 %v488_v56 }
 0x3e2   :  { %654 = vmatmul.mubr.bf16.vlgmr.msra.gmra.mrb[4].mxu0 %v487_v57  ;;  %v1284_v57 = vld [vmem:[#allocation7 + $0xa0] sm:$0xff]  }
 0x3e3   :  { %1177 = vmatprep.mubr.msk.bf16.mxu0 %vm1402_vm0, %v1401_v1  ;;  %1162 = vmatpush3.bf16.msra.mxu0 %v1272_v11 }
 0x3e4   :  { %1163 = vmatprep.subr.bf16.mxu0 %v1401_v1 }
 0x3e7   :  { %1164 = vmatpush3.bf16.msra.mxu0 %v1273_v12 }
 0x3e8   :  { %1165 = vmatprep.subr.bf16.mxu0 %v1401_v1 }
 0x3eb   :  { %1166 = vmatpush3.bf16.msra.mxu0 %v1274_v13 }
 0x3ec   :  { %1167 = vmatprep.subr.bf16.mxu0 %v1401_v1 }
 0x3ef   :  { %1168 = vmatpush3.bf16.msra.mxu0 %v1275_v14 }
 0x3f0   :  { %1169 = vmatprep.subr.bf16.mxu0 %v1401_v1 }
 0x3f3   :  { %1170 = vmatpush3.bf16.msra.mxu0 %v1276_v16 }
 0x3f4   :  { %1171 = vmatprep.subr.bf16.mxu0 %v1401_v1 }
 0x3f7   :  { %1172 = vmatpush3.bf16.msra.mxu0 %v1277_v17 }
 0x3f8   :  { %1173 = vmatprep.subr.bf16.mxu0 %v1401_v1 }
 0x3fb   :  { %1174 = vmatpush3.bf16.msra.mxu0 %v1278_v35 }
 0x3fc   :  { %1175 = vmatprep.subr.bf16.mxu0 %v1401_v1 }
 0x3ff   :  { %1176 = vmatpush3.bf16.msra.mxu0 %v1279_v36 }
 0x4b5   :  { %v1088_v58 = vpop.f32.mrb[4].mxu0 }
 0x4b6   :  { %v1089_v60 = vpop.f32.mrb[5].mxu0 }
 0x4b7   :  { %v1090_v61 = vadd.f32 %v1089_v60, %v1088_v58  ;;  %v1091_v62 = vpop.f32.mrb[6].mxu0  ;;  %v1286_v58 = vld [vmem:[#allocation7 + $0xb0] sm:$0xff]  }
 0x4b8   :  { %v1092_v63 = vpop.f32.mrb[7].mxu0 }
 0x4b9   :  { %v656_v0 = vadd.f32 %v1090_v61, %v1017_v59  ;;  %v1287_v59 = vld [vmem:[#allocation7 + $0xb8] sm:$0xff]  }
 0x4bb   :  { %661 = vadd.xlane.f32.xlu1 %v656_v0  ;;  %v664_v2 = vmul.f32 %v656_v0, %v656_v0 }
 0x4bf   :  { %665 = vadd.xlane.f32.xlu1 %v664_v2 }
 0x548   :  { %v662_v18 = vpop.xlane.xlu1 %661 }
 0x549   :  { %v663_v19 = vmul.f32 0.0078125, %v662_v18 }
 0x54b   :  { %v668_v21 = vmul.f32 %v663_v19, %v663_v19  ;;  %v671_v26 = vsub.f32 %v656_v0, %v663_v19 }
 0x54c   :  { %v666_v20 = vpop.xlane.xlu1 %665 }
 0x54d   :  { %v667_v22 = vmul.f32 0.0078125, %v666_v20 }
 0x54f   :  { %v669_v23 = vsub.f32 %v667_v22, %v668_v21 }
 0x551   :  { %v670_v24 = vmax.f32 %v669_v23, 0.0 }
 0x553   :  { %v672_v25 = vadd.f32 1e-05, %v670_v24 }
 0x555   :  { %1292 = vrsqrt.f32 %v672_v25 }
 0x55f   :  { %v1293_v27 = vpop.eup %1292 }
 0x560   :  { %v674_v29 = vmul.f32 %v1293_v27, %v671_v26 }
 0x562   :  { %v679_v31 = vmul.f32 %v1034_v28, %v674_v29 }
 0x564   :  { %v684_v32 = vadd.f32 %v1035_v30, %v679_v31 }
 0x566   :  { %v685_v33 = vmax.f32 %v684_v32, 0.0 }
 0x568   :  { %v686_v34 = vpack.c.bf16 %v685_v33, %v685_v33 }
 0x56a   :  { %1158 = vmatmul.mubr.bf16.vlgmr.msra.gmra.mrb[4].mxu1 %v686_v34 }
 0x56b   :  { %1197 = vmatprep.mubr.msk.bf16.mxu1 %vm1402_vm0, %v1401_v1  ;;  %1182 = vmatpush3.bf16.msra.mxu1 %v1280_v45 }
 0x56c   :  { %1183 = vmatprep.subr.bf16.mxu1 %v1401_v1 }
 0x56f   :  { %1184 = vmatpush3.bf16.msra.mxu1 %v1281_v46 }
 0x570   :  { %1185 = vmatprep.subr.bf16.mxu1 %v1401_v1 }
 0x573   :  { %1186 = vmatpush3.bf16.msra.mxu1 %v1282_v47 }
 0x574   :  { %1187 = vmatprep.subr.bf16.mxu1 %v1401_v1 }
 0x577   :  { %1188 = vmatpush3.bf16.msra.mxu1 %v1283_v48 }
 0x578   :  { %1189 = vmatprep.subr.bf16.mxu1 %v1401_v1 }
 0x57b   :  { %1190 = vmatpush3.bf16.msra.mxu1 %v1284_v57 }
 0x57c   :  { %1191 = vmatprep.subr.bf16.mxu1 %v1401_v1 }
 0x57f   :  { %1192 = vmatpush3.bf16.msra.mxu1 %v1285_v15 }
 0x580   :  { %1193 = vmatprep.subr.bf16.mxu1 %v1401_v1 }
 0x583   :  { %1194 = vmatpush3.bf16.msra.mxu1 %v1286_v58 }
 0x584   :  { %1195 = vmatprep.subr.bf16.mxu1 %v1401_v1 }
 0x587   :  { %1196 = vmatpush3.bf16.msra.mxu1 %v1287_v59 }
 0x63d   :  { %v773_v38 = vpop.f32.mrb[4].mxu1 }
 0x63e   :  { %v774_v39 = vadd.f32 %v1036_v37, %v773_v38  ;;  %v1159_v40 = vpop.f32.mrb[5].mxu1 }
 0x63f   :  { %v776_v41 = vpop.f32.mrb[6].mxu1 }
 0x640   :  { %v779_v42 = vmax.f32 %v774_v39, 0.0  ;;  %v1160_v43 = vpop.f32.mrb[7].mxu1 }
 0x642   :  { %v780_v44 = vpack.c.bf16 %v779_v42, %v779_v42 }
 0x644   :  { %1178 = vmatmul.mubr.bf16.vlgmr.msra.gmra.mrb[8].mxu0 %v780_v44 }
 0x717   :  { %v867_v50 = vpop.f32.mrb[8].mxu0 }
 0x718   :  { %v868_v52 = vadd.f32 %v1045_v49, %v867_v50  ;;  %v1179_v53 = vpop.f32.mrb[9].mxu0 }
 0x719   :  { %v870_v54 = vpop.f32.mrb[10].mxu0 }
 0x71a   :  { %v1180_v55 = vpop.f32.mrb[11].mxu0  ;;  %v878_v56 = vsel %vm1605_vm4, %v868_v52, -1e+30 }
 0x71b   :  { %879 = vmax.xlane.f32.xlu1 %v878_v56 }
 0x7a8   :  { %v880_v60 = vpop.xlane.xlu1 %879 }
 0x7a9   :  { %v881_v61 = vsub.f32 %v868_v52, %v880_v60 }
 0x7ab   :  { %v882_v62 = vsel %vm1605_vm4, %v881_v61, -1e+30 }
 0x7ac   :  { %v883_v63 = vmul.f32 1.442695, %v882_v62 }
 0x7ae   :  { %1294 = vpow2.f32 %v883_v63 }
 0x7b8   :  { %v1295_v0 = vpop.eup %1294 }
 0x7b9   :  { %v885_v2 = vpack.c.bf16 %v1295_v0, %v1295_v0 }
 0x7bb   :  { %1198 = vmatmul.mubr.bf16.vlgmr.msra.gmra.mrb[8].mxu1 %v885_v2 }
 0x88e   :  { %v969_v5 = vpop.f32.mrb[8].mxu1 }
 0x88f   :  { %v970_v6 = vadd.f32 %v969_v5, %v886_v4  ;;  %v1199_v7 = vpop.f32.mrb[9].mxu1 }
 0x890   :  { %v972_v8 = vpop.f32.mrb[10].mxu1 }
 0x891   :  { %v975_v9 = vmax.f32 %v970_v6, 1e-30  ;;  %v1200_v10 = vpop.f32.mrb[11].mxu1 }
 0x893   :  { %1296 = vrcp.f32 %v975_v9 }
 0x89d   :  { %v1297_v11 = vpop.eup %1296 }
 0x89e   :  { %v977_v12 = vmul.f32 %v1297_v11, %v1295_v0 }
 0x8a0   :  { %v978_v13 = vadd.f32 %v977_v12, %v774_v39 }
 0x8a2   :  { %979 = vst [vmem:[%s1629_s7] sm:$0xff] %v978_v13 }
 0x8a3   :  { %984 = vsyncpa [#allocation3], 1 }
 0x8a4   :  { %985 = vsyncpa [#allocation5], 1 }
 0x8a5   :  { %986 = vsyncpa [#allocation8], 1 }

</bundles_post_ra>
